<compile_context>
chip_gen: v7x
topology: tpu7x:2x2x1
jax: 0.10.0
libtpu: 0.0.40
codegen_flags: <defaults>
</compile_context>

<pallas_src>
import functools

import jax
import jax.numpy as jnp
from jax.experimental import pallas as pl
from jax.experimental.pallas import tpu as pltpu

HIDDEN = 100        # torch module's hidden width
HIDDEN_PAD = 128    # padded to one full lane tile
LANE = 128

# Working-set budget kept below every generation's scoped-VMEM default
# (16 MiB on v5e); vmem_limit_bytes gives extra headroom for larger feature
# widths while staying well under v7x's 64 MiB physical VMEM.
_VMEM_BUDGET = 24 * 1024 * 1024
_VMEM_LIMIT = 48 * 1024 * 1024


def _round_up(n, m):
    return (n + m - 1) // m * m


def _default_num_batch_tiles():
    """v7x has 2 TensorCores per chip: split the batch into 2 'parallel'
    tiles so both cores get work.  v5e/v6e have a single TC, where grid=1
    minimizes per-step pipeline overhead."""
    try:
        kind = jax.devices()[0].device_kind.lower()
    except Exception:
        return 1
    return 2 if ("v7" in kind or "7x" in kind) else 1


def mlp_kernel(x_ref, w1_ref, b1_ref, w2_ref, b2_ref, o_ref):
    # First linear: bf16 operands on the MXU, f32 accumulation.
    x = x_ref[...].astype(jnp.bfloat16)
    h = jnp.dot(x, w1_ref[...], preferred_element_type=jnp.float32)
    # Bias add + ReLU in f32 on the VPU (full 128-lane vregs thanks to padding).
    h = jnp.maximum(h + b1_ref[...], 0.0)
    # Second linear: bf16 operands, f32 accumulation.
    out = jnp.dot(h.astype(jnp.bfloat16), w2_ref[...],
                  preferred_element_type=jnp.float32)
    out = out + b2_ref[...]
    # Store only the real out_features columns (o_ref's last dim is unpadded):
    # avoids writing 8x lane-padded output plus a separate wrapper slice pass.
    o_ref[...] = out[:, :o_ref.shape[1]].astype(o_ref.dtype)


def prepare_params(w1_t, b1_t, w2_t, b2_t):
    """Convert torch-layout params (W: [out, in], b: [out]) into padded,
    transposed, TPU-friendly operands.  Done once, not per call.

      w1: [in, 128]        bf16   (hidden 100 -> 128, zero pad)
      b1: [1, 128]         f32
      w2: [128, out_pad]   bf16   (out_features -> multiple of 128, zero pad)
      b2: [1, out_pad]     f32

    Zero padding is exact: padded hidden units are ReLU(0 + 0) = 0 and padded
    w2 rows/columns are zero, so results match the unpadded math.
    """
    in_features = w1_t.shape[1]
    out_features = w2_t.shape[0]
    out_pad = _round_up(out_features, LANE)

    w1 = jnp.zeros((in_features, HIDDEN_PAD), jnp.float32)
    w1 = w1.at[:, :HIDDEN].set(w1_t.T)
    b1 = jnp.zeros((1, HIDDEN_PAD), jnp.float32).at[:, :HIDDEN].set(b1_t)

    w2 = jnp.zeros((HIDDEN_PAD, out_pad), jnp.float32)
    w2 = w2.at[:HIDDEN, :out_features].set(w2_t.T)
    b2 = jnp.zeros((1, out_pad), jnp.float32).at[:, :out_features].set(b2_t)

    return w1.astype(jnp.bfloat16), b1, w2.astype(jnp.bfloat16), b2, out_features


@functools.partial(jax.jit, static_argnames=("out_features", "num_batch_tiles"))
def q_forward(x, w1, b1, w2, b2, *, out_features, num_batch_tiles=None):
    """Fused MLP forward.  x: [B, in] f32 -> [B, out_features] f32."""
    B, f_in = x.shape
    out_pad = w2.shape[1]

    if num_batch_tiles is None:
        num_batch_tiles = _default_num_batch_tiles()

    # --- batch-tile selection (generation aware + VMEM budgeted) -----------
    # Resident operands (double-buffered by the pipeline): bf16 weights + f32
    # biases.  Per batch-row cost: double-buffered x tile + out tile + the
    # f32 intermediates (h and the pre-slice second-matmul result).
    bytes_fixed = (2 * 2 * (f_in * HIDDEN_PAD + HIDDEN_PAD * out_pad)
                   + 2 * 4 * (HIDDEN_PAD + out_pad))
    bytes_per_row = (2 * 4 * f_in + 2 * 4 * out_features
                     + 4 * (HIDDEN_PAD + out_pad))
    tb_cap = max(8, ((_VMEM_BUDGET - bytes_fixed) // bytes_per_row) // 8 * 8)

    tb = -(-B // num_batch_tiles)              # ceil divide
    tb = min(_round_up(tb, 8), tb_cap)

    if tb >= B:
        # Single tile == full array: no batch padding needed (even if B % 8).
        tb, b_pad = B, B
    else:
        b_pad = _round_up(B, tb)
    grid = b_pad // tb

    if b_pad != B:
        # Rare fallback (only when tb doesn't divide B); the common
        # configurations (grid=1, or an even split in two) avoid this pad.
        x = jnp.pad(x, ((0, b_pad - B), (0, 0)))

    flops = 2 * b_pad * (f_in * HIDDEN_PAD + HIDDEN_PAD * out_pad)
    bytes_accessed = (
        b_pad * f_in * x.dtype.itemsize
        + w1.size * w1.dtype.itemsize + b1.size * b1.dtype.itemsize
        + w2.size * w2.dtype.itemsize + b2.size * b2.dtype.itemsize
        + b_pad * out_features * 4)

    out = pl.pallas_call(
        mlp_kernel,
        out_shape=jax.ShapeDtypeStruct((b_pad, out_features), jnp.float32),
        grid_spec=pl.GridSpec(
            grid=(grid,),
            in_specs=[
                # x: tiled over batch, software-pipelined against MXU compute.
                pl.BlockSpec((tb, f_in), lambda i: (i, 0)),
                # Weights/biases: constant index_map -> VMEM-resident across
                # grid steps.  (Single-buffering via pipeline_mode would halve
                # their footprint, but they are only ~100 KiB here; the VMEM
                # headroom is handled by the tb budget above instead.)
                pl.BlockSpec(w1.shape, lambda i: (0, 0)),
                pl.BlockSpec(b1.shape, lambda i: (0, 0)),
                pl.BlockSpec(w2.shape, lambda i: (0, 0)),
                pl.BlockSpec(b2.shape, lambda i: (0, 0)),
            ],
            # Unpadded output block: with out_features << 128 this cuts output
            # HBM traffic ~8x vs. a lane-padded store + separate XLA slice.
            out_specs=pl.BlockSpec((tb, out_features), lambda i: (i, 0)),
        ),
        compiler_params=pltpu.CompilerParams(
            dimension_semantics=("parallel",),
            vmem_limit_bytes=_VMEM_LIMIT),
        cost_estimate=pl.CostEstimate(
            flops=flops, transcendentals=0, bytes_accessed=bytes_accessed),
    )(x, w1, b1, w2, b2)

    return out if b_pad == B else out[:B]


def init_torch_like_params(key, in_features, out_features, dtype=jnp.float32):
    """Deterministic init mimicking torch.nn.Linear (uniform +-1/sqrt(fan_in)),
    in torch layout: W [out, in], b [out]."""
    k1, k2, k3, k4 = jax.random.split(key, 4)
    bound1 = 1.0 / jnp.sqrt(in_features)
    bound2 = 1.0 / jnp.sqrt(HIDDEN)
    w1_t = jax.random.uniform(k1, (HIDDEN, in_features), dtype, -bound1, bound1)
    b1_t = jax.random.uniform(k2, (HIDDEN,), dtype, -bound1, bound1)
    w2_t = jax.random.uniform(k3, (out_features, HIDDEN), dtype, -bound2, bound2)
    b2_t = jax.random.uniform(k4, (out_features,), dtype, -bound2, bound2)
    return w1_t, b1_t, w2_t, b2_t


if __name__ == "__main__":
    key = jax.random.PRNGKey(0)
    kx, kp = jax.random.split(key)

    batch, in_features, out_features = 128, 32, 16
    x = jax.random.normal(kx, (batch, in_features), jnp.float32)
    w1_t, b1_t, w2_t, b2_t = init_torch_like_params(kp, in_features, out_features)

    w1, b1, w2, b2, out_f = prepare_params(w1_t, b1_t, w2_t, b2_t)

    out = q_forward(x, w1, b1, w2, b2, out_features=out_f)
    out = jax.block_until_ready(out)
    assert out.shape == (batch, out_features)

    # Reference 1: emulate the same bf16-operand / f32-accumulate path in
    # plain JAX -> should match the kernel tightly.
    h_ref = jnp.maximum(
        jnp.dot(x.astype(jnp.bfloat16), w1, preferred_element_type=jnp.float32)
        + b1, 0.0)
    ref_bf16 = (jnp.dot(h_ref.astype(jnp.bfloat16), w2,
                        preferred_element_type=jnp.float32) + b2)[:, :out_f]
    assert jnp.allclose(out, ref_bf16, atol=1e-4, rtol=1e-4)

    # Reference 2: full-f32 torch-style math -> loose tolerance due to bf16
    # MXU operands (expected ~1e-2 relative).
    ref_f32 = jnp.maximum(x @ w1_t.T + b1_t, 0.0) @ w2_t.T + b2_t
    assert jnp.allclose(out, ref_f32, atol=2e-2, rtol=2e-2)

    print("KERNEL_OK")
</pallas_src>

<mosaic_0001>
module attributes {stable_mosaic.version = 11 : i64} {
  func.func @mlp_kernel(%arg0: i32, %arg1: memref<128x32xf32, #tpu.memory_space<vmem>>, %arg2: memref<32x128xbf16, #tpu.memory_space<vmem>>, %arg3: memref<1x128xf32, #tpu.memory_space<vmem>>, %arg4: memref<128x128xbf16, #tpu.memory_space<vmem>>, %arg5: memref<1x128xf32, #tpu.memory_space<vmem>>, %arg6: memref<128x16xf32, #tpu.memory_space<vmem>>) attributes {dimension_semantics = [#tpu.dimension_semantics<parallel>], iteration_bounds = array<i64: 1>, scalar_prefetch = 0 : i64, scratch_operands = 0 : i64, tpu.core_type = #tpu.core_type<tc>, window_params = [{transform_indices = @transform_0, window_bounds = array<i64: 128, 32>}, {pipeline_mode = #tpu.pipeline_mode<synchronous>, transform_indices = @transform_1, window_bounds = array<i64: 32, 128>}, {pipeline_mode = #tpu.pipeline_mode<synchronous>, transform_indices = @transform_2, window_bounds = array<i64: 1, 128>}, {pipeline_mode = #tpu.pipeline_mode<synchronous>, transform_indices = @transform_3, window_bounds = array<i64: 128, 128>}, {pipeline_mode = #tpu.pipeline_mode<synchronous>, transform_indices = @transform_4, window_bounds = array<i64: 1, 128>}, {transform_indices = @transform_5, window_bounds = array<i64: 128, 16>}]} {
    %c0 = arith.constant 0 : index
    %c0_0 = arith.constant 0 : index
    %0 = vector.load %arg1[%c0, %c0_0] : memref<128x32xf32, #tpu.memory_space<vmem>>, vector<128x32xf32>
    %1 = arith.truncf %0 : vector<128x32xf32> to vector<128x32xbf16>
    %c0_1 = arith.constant 0 : index
    %c0_2 = arith.constant 0 : index
    %2 = vector.load %arg2[%c0_1, %c0_2] : memref<32x128xbf16, #tpu.memory_space<vmem>>, vector<32x128xbf16>
    %cst = arith.constant dense<0.000000e+00> : vector<128x128xf32>
    %3 = tpu.matmul %1, %2, %cst {dimension_numbers = #tpu.dot_dimension_numbers<[1], [0], [0], [1], [0, 0, 1, 1], [], []>} : vector<128x32xbf16>, vector<32x128xbf16>, vector<128x128xf32> -> vector<128x128xf32>
    %c0_3 = arith.constant 0 : index
    %c0_4 = arith.constant 0 : index
    %4 = vector.load %arg3[%c0_3, %c0_4] : memref<1x128xf32, #tpu.memory_space<vmem>>, vector<1x128xf32>
    %5 = vector.broadcast %4 : vector<1x128xf32> to vector<128x128xf32>
    %6 = arith.addf %3, %5 : vector<128x128xf32>
    %cst_5 = arith.constant 0.000000e+00 : f32
    %7 = vector.broadcast %cst_5 : f32 to vector<128x128xf32>
    %8 = arith.maximumf %6, %7 : vector<128x128xf32>
    %9 = arith.truncf %8 : vector<128x128xf32> to vector<128x128xbf16>
    %c0_6 = arith.constant 0 : index
    %c0_7 = arith.constant 0 : index
    %10 = vector.load %arg4[%c0_6, %c0_7] : memref<128x128xbf16, #tpu.memory_space<vmem>>, vector<128x128xbf16>
    %cst_8 = arith.constant dense<0.000000e+00> : vector<128x128xf32>
    %11 = tpu.matmul %9, %10, %cst_8 {dimension_numbers = #tpu.dot_dimension_numbers<[1], [0], [0], [1], [0, 0, 1, 1], [], []>} : vector<128x128xbf16>, vector<128x128xbf16>, vector<128x128xf32> -> vector<128x128xf32>
    %c0_9 = arith.constant 0 : index
    %c0_10 = arith.constant 0 : index
    %12 = vector.load %arg5[%c0_9, %c0_10] : memref<1x128xf32, #tpu.memory_space<vmem>>, vector<1x128xf32>
    %13 = vector.broadcast %12 : vector<1x128xf32> to vector<128x128xf32>
    %14 = arith.addf %11, %13 : vector<128x128xf32>
    %15 = vector.extract_strided_slice %14 {offsets = [0, 0], sizes = [128, 16], strides = [1, 1]} : vector<128x128xf32> to vector<128x16xf32>
    %c0_11 = arith.constant 0 : index
    %c0_12 = arith.constant 0 : index
    %16 = vector.load %arg6[%c0_11, %c0_12] : memref<128x16xf32, #tpu.memory_space<vmem>>, vector<128x16xf32>
    tpu.vector_store %arg6[%c0_11, %c0_12], %15 {strides = array<i32>} : memref<128x16xf32, #tpu.memory_space<vmem>>, vector<128x16xf32>,
    return
  }
  func.func @transform_0(%arg0: i32) -> (i32, i32) {
    %c0_i32 = arith.constant 0 : i32
    %c0_i32_0 = arith.constant 0 : i32
    return %arg0, %c0_i32 : i32, i32
  }
  func.func @transform_1(%arg0: i32) -> (i32, i32) {
    %c0_i32 = arith.constant 0 : i32
    %c0_i32_0 = arith.constant 0 : i32
    %c0_i32_1 = arith.constant 0 : i32
    return %c0_i32, %c0_i32_0 : i32, i32
  }
  func.func @transform_2(%arg0: i32) -> (i32, i32) {
    %c0_i32 = arith.constant 0 : i32
    %c0_i32_0 = arith.constant 0 : i32
    %c0_i32_1 = arith.constant 0 : i32
    return %c0_i32, %c0_i32_0 : i32, i32
  }
  func.func @transform_3(%arg0: i32) -> (i32, i32) {
    %c0_i32 = arith.constant 0 : i32
    %c0_i32_0 = arith.constant 0 : i32
    %c0_i32_1 = arith.constant 0 : i32
    return %c0_i32, %c0_i32_0 : i32, i32
  }
  func.func @transform_4(%arg0: i32) -> (i32, i32) {
    %c0_i32 = arith.constant 0 : i32
    %c0_i32_0 = arith.constant 0 : i32
    %c0_i32_1 = arith.constant 0 : i32
    return %c0_i32, %c0_i32_0 : i32, i32
  }
  func.func @transform_5(%arg0: i32) -> (i32, i32) {
    %c0_i32 = arith.constant 0 : i32
    %c0_i32_0 = arith.constant 0 : i32
    return %arg0, %c0_i32 : i32, i32
  }
}

</mosaic_0001>

<bundles_post_ra>
// kernel: q_forward.1
= control target key start
LH: loop header
LB: loop body
LE: loop exit
PB: predicated region body
PF: predicated region fallthrough
CT: control target
= control target key end

     0   :  { %vm68_vm0 = vcmask 261120   ;;  %vm382_vm1 = vcmask 130048   ;;  %s713_s1 = inlined_call_operand.vmem [shape: bf16[32,128], index: 1, kind: input, shape index: {}]   ;;  %s714_s0 = inlined_call_operand.vmem [shape: f32[128,32], index: 0, kind: input, shape index: {}]   ;;  %s715_s3 = inlined_call_operand.vmem [shape: bf16[128,128], index: 3, kind: input, shape index: {}]   ;;  %s716_s2 = inlined_call_operand.vmem [shape: f32[1,128], index: 2, kind: input, shape index: {}]   ;;  %s717_s4 = inlined_call_operand.vmem [shape: f32[1,128], index: 4, kind: input, shape index: {}]   ;;  %s718_s5 = inlined_call_operand.vmem [shape: f32[128,16], index: 5, kind: output, shape index: {}]  }
   0x1   :  { %v517_v0 = vld [vmem:[%s713_s1] sm:$0xff]   ;;  %v518_v1 = vld [vmem:[%s713_s1 + $0x8] sm:$0xff]   ;;  %v23_v5 = vld [vmem:[%s714_s0 + $0x10] sm:$0xff] }
   0x2   :  { %449 = vmatprep.subr.bf16.mxu0 %v517_v0  ;;  %v21_v2 = vld [vmem:[%s714_s0] sm:$0xff]  ;;  %v22_v3 = vld [vmem:[%s714_s0 + $0x8] sm:$0xff]  ;;  %v24_v6 = vld [vmem:[%s714_s0 + $0x18] sm:$0xff] }
   0x3   :  { %450 = vmatpush3.bf16.msra.mxu0 %v517_v0  ;;  %v37_v4 = vpack.c.bf16 %v22_v3, %v21_v2  ;;  %v25_v7 = vld [vmem:[%s714_s0 + $0x20] sm:$0xff]  ;;  %v26_v8 = vld [vmem:[%s714_s0 + $0x28] sm:$0xff]  ;;  %v38_v9 = vpack.c.bf16 %v24_v6, %v23_v5  ;;  %v27_v12 = vld [vmem:[%s714_s0 + $0x30] sm:$0xff] }
   0x4   :  { %451 = vmatprep.subr.bf16.mxu0 %v518_v1  ;;  %v39_v10 = vpack.c.bf16 %v26_v8, %v25_v7  ;;  %v519_v11 = vld [vmem:[%s715_s3] sm:$0xff]   ;;  %v28_v13 = vld [vmem:[%s714_s0 + $0x38] sm:$0xff]  ;;  %v520_v14 = vld [vmem:[%s715_s3 + $0x8] sm:$0xff]  }
   0x5   :  { %453 = vmatprep.mubr.msk.bf16.mxu0 %vm68_vm0, %v37_v4  ;;  %v29_v15 = vld [vmem:[%s714_s0 + $0x40] sm:$0xff]  ;;  %v30_v16 = vld [vmem:[%s714_s0 + $0x48] sm:$0xff]  ;;  %501 = vmatprep.subr.bf16.mxu1 %v519_v11  ;;  %v521_v17 = vld [vmem:[%s715_s3 + $0x10] sm:$0xff]   ;;  %v40_v18 = vpack.c.bf16 %v28_v13, %v27_v12 }
   0x6   :  { %509 = vmatpush3.bf16.msra.mxu1 %v519_v11  ;;  %v41_v19 = vpack.c.bf16 %v30_v16, %v29_v15  ;;  %v522_v20 = vld [vmem:[%s715_s3 + $0x18] sm:$0xff]   ;;  %v31_v21 = vld [vmem:[%s714_s0 + $0x50] sm:$0xff]  ;;  %v33_v23 = vld [vmem:[%s714_s0 + $0x60] sm:$0xff] }
   0x7   :  { %452 = vmatpush3.bf16.msra.mxu0 %v518_v1  ;;  %502 = vmatprep.subr.bf16.mxu1 %v520_v14  ;;  %v32_v22 = vld [vmem:[%s714_s0 + $0x58] sm:$0xff]  ;;  %v34_v24 = vld [vmem:[%s714_s0 + $0x68] sm:$0xff]  ;;  %v523_v25 = vld [vmem:[%s715_s3 + $0x20] sm:$0xff]  }
   0x8   :  { %469 = vmatprep.subr.bf16.mxu0 %v519_v11  ;;  %v42_v26 = vpack.c.bf16 %v32_v22, %v31_v21  ;;  %v43_v27 = vpack.c.bf16 %v34_v24, %v33_v23  ;;  %v524_v28 = vld [vmem:[%s715_s3 + $0x28] sm:$0xff]   ;;  %v35_v29 = vld [vmem:[%s714_s0 + $0x70] sm:$0xff]  ;;  %v36_v30 = vld [vmem:[%s714_s0 + $0x78] sm:$0xff] }
   0x9   :  { %v44_v31 = vpack.c.bf16 %v36_v30, %v35_v29  ;;  %v525_v32 = vld [vmem:[%s715_s3 + $0x30] sm:$0xff]   ;;  %v526_v33 = vld [vmem:[%s715_s3 + $0x38] sm:$0xff]   ;;  %v403_v34 = vld [vmem:[%s716_s2] ss:$0 sm:$0xff] }
   0xa   :  { %454 = vmatmul.mubr.msk.bf16.vlgmr.msra.gmra.mrb[0].mxu0 %vm68_vm0, %v38_v9  ;;  %510 = vmatpush3.bf16.msra.mxu1 %v520_v14 }
   0xb   :  { %457 = vmatprep.mubr.msk.bf16.mxu0 %vm68_vm0, %v39_v10  ;;  %470 = vmatpush3.bf16.msra.mxu0 %v519_v11 }
   0xc   :  { %471 = vmatprep.subr.bf16.mxu0 %v520_v14  ;;  %503 = vmatprep.subr.bf16.mxu1 %v521_v17 }
   0xe   :  { %511 = vmatpush3.bf16.msra.mxu1 %v521_v17 }
   0xf   :  { %472 = vmatpush3.bf16.msra.mxu0 %v520_v14  ;;  %504 = vmatprep.subr.bf16.mxu1 %v522_v20 }
  0x10   :  { %473 = vmatprep.subr.bf16.mxu0 %v521_v17 }
  0x12   :  { %458 = vmatmul.mubr.msk.bf16.gmra.mrb[4].mxu0 %vm68_vm0, %v40_v18  ;;  %512 = vmatpush3.bf16.msra.mxu1 %v522_v20 }
  0x13   :  { %461 = vmatprep.mubr.msk.bf16.mxu0 %vm68_vm0, %v41_v19  ;;  %474 = vmatpush3.bf16.msra.mxu0 %v521_v17 }
  0x14   :  { %475 = vmatprep.subr.bf16.mxu0 %v522_v20  ;;  %505 = vmatprep.subr.bf16.mxu1 %v523_v25 }
  0x16   :  { %513 = vmatpush3.bf16.msra.mxu1 %v523_v25 }
  0x17   :  { %476 = vmatpush3.bf16.msra.mxu0 %v522_v20  ;;  %506 = vmatprep.subr.bf16.mxu1 %v524_v28 }
  0x18   :  { %477 = vmatprep.subr.bf16.mxu0 %v523_v25 }
  0x1a   :  { %462 = vmatmul.mubr.msk.bf16.gmra.mrb[8].mxu0 %vm68_vm0, %v42_v26  ;;  %514 = vmatpush3.bf16.msra.mxu1 %v524_v28 }
  0x1b   :  { %465 = vmatprep.mubr.msk.bf16.mxu0 %vm68_vm0, %v43_v27  ;;  %478 = vmatpush3.bf16.msra.mxu0 %v523_v25  ;;  %v414_v27 = vld [vmem:[%s717_s4] ss:$0 sm:$0xff] }
  0x1c   :  { %479 = vmatprep.subr.bf16.mxu0 %v524_v28  ;;  %507 = vmatprep.subr.bf16.mxu1 %v525_v32 }
  0x1e   :  { %515 = vmatpush3.bf16.msra.mxu1 %v525_v32 }
  0x1f   :  { %480 = vmatpush3.bf16.msra.mxu0 %v524_v28  ;;  %508 = vmatprep.subr.bf16.mxu1 %v526_v33 }
  0x20   :  { %481 = vmatprep.subr.bf16.mxu0 %v525_v32 }
  0x22   :  { %466 = vmatmul.mubr.msk.bf16.gmra.mrb[12].mxu0 %vm68_vm0, %v44_v31  ;;  %516 = vmatpush3.bf16.msra.mxu1 %v526_v33 }
  0x23   :  { %482 = vmatpush3.bf16.msra.mxu0 %v525_v32 }
  0x24   :  { %483 = vmatprep.subr.bf16.mxu0 %v526_v33 }
  0x27   :  { %484 = vmatpush3.bf16.msra.mxu0 %v526_v33 }
  0xdd   :  { %v455_v35 = vpop.f32.mrb[0].mxu0 }
  0xde   :  { %v136_v36 = vadd.f32 %v455_v35, %v403_v34  ;;  %v127_v37 = vpop.f32.mrb[1].mxu0 }
  0xdf   :  { %v128_v38 = vadd.f32 %v403_v34, %v127_v37  ;;  %v456_v39 = vpop.f32.mrb[2].mxu0 }
  0xe0   :  { %v139_v40 = vadd.f32 %v456_v39, %v403_v34  ;;  %v130_v41 = vpop.f32.mrb[3].mxu0  ;;  %v192_v43 = vmax.f32 %v136_v36, 0.0 }
  0xe1   :  { %v131_v42 = vadd.f32 %v403_v34, %v130_v41  ;;  %v190_v45 = vmax.f32 %v128_v38, 0.0 }
  0xe2   :  { %v193_v44 = vmax.f32 %v139_v40, 0.0 }
  0xe3   :  { %v191_v46 = vmax.f32 %v131_v42, 0.0 }
  0xe4   :  { %v207_v47 = vpack.c.bf16 %v193_v44, %v192_v43 }
  0xe5   :  { %v206_v48 = vpack.c.bf16 %v191_v46, %v190_v45  ;;  %v459_v49 = vpop.f32.mrb[4].mxu0 }
  0xe6   :  { %v152_v50 = vadd.f32 %v459_v49, %v403_v34  ;;  %v143_v51 = vpop.f32.mrb[5].mxu0 }
  0xe7   :  { %v144_v52 = vadd.f32 %v403_v34, %v143_v51  ;;  %v460_v53 = vpop.f32.mrb[6].mxu0  ;;  %485 = vmatprep.mubr.bf16.mxu0 %v206_v48 }
  0xe8   :  { %v155_v54 = vadd.f32 %v460_v53, %v403_v34  ;;  %v146_v55 = vpop.f32.mrb[7].mxu0  ;;  %486 = vmatmul.mubr.bf16.vlgmr.msra.gmra.mrb[16].mxu0 %v207_v47  ;;  %v196_v57 = vmax.f32 %v152_v50, 0.0 }
  0xe9   :  { %v147_v56 = vadd.f32 %v403_v34, %v146_v55  ;;  %v194_v59 = vmax.f32 %v144_v52, 0.0 }
  0xea   :  { %v197_v58 = vmax.f32 %v155_v54, 0.0 }
  0xeb   :  { %v195_v60 = vmax.f32 %v147_v56, 0.0 }
  0xec   :  { %v209_v61 = vpack.c.bf16 %v197_v58, %v196_v57 }
  0xed   :  { %v463_v62 = vpop.f32.mrb[8].mxu0  ;;  %v208_v63 = vpack.c.bf16 %v195_v60, %v194_v59 }
  0xee   :  { %v168_v0 = vadd.f32 %v463_v62, %v403_v34  ;;  %v159_v1 = vpop.f32.mrb[9].mxu0 }
  0xef   :  { %v160_v2 = vadd.f32 %v403_v34, %v159_v1  ;;  %v464_v3 = vpop.f32.mrb[10].mxu0  ;;  %489 = vmatprep.mubr.bf16.mxu1 %v208_v63 }
  0xf0   :  { %v171_v4 = vadd.f32 %v464_v3, %v403_v34  ;;  %v162_v5 = vpop.f32.mrb[11].mxu0  ;;  %490 = vmatmul.mubr.bf16.vlgmr.msra.gmra.mrb[0].mxu1 %v209_v61  ;;  %v200_v7 = vmax.f32 %v168_v0, 0.0 }
  0xf1   :  { %v163_v6 = vadd.f32 %v403_v34, %v162_v5  ;;  %v198_v9 = vmax.f32 %v160_v2, 0.0 }
  0xf2   :  { %v201_v8 = vmax.f32 %v171_v4, 0.0 }
  0xf3   :  { %v199_v10 = vmax.f32 %v163_v6, 0.0 }
  0xf4   :  { %v211_v11 = vpack.c.bf16 %v201_v8, %v200_v7 }
  0xf5   :  { %v210_v12 = vpack.c.bf16 %v199_v10, %v198_v9  ;;  %v467_v13 = vpop.f32.mrb[12].mxu0 }
  0xf6   :  { %v184_v14 = vadd.f32 %v467_v13, %v403_v34  ;;  %v175_v15 = vpop.f32.mrb[13].mxu0 }
  0xf7   :  { %v176_v16 = vadd.f32 %v403_v34, %v175_v15  ;;  %v468_v17 = vpop.f32.mrb[14].mxu0  ;;  %493 = vmatprep.mubr.bf16.mxu1 %v210_v12 }
  0xf8   :  { %v187_v18 = vadd.f32 %v468_v17, %v403_v34  ;;  %v178_v19 = vpop.f32.mrb[15].mxu0  ;;  %494 = vmatmul.mubr.bf16.gmra.mrb[4].mxu1 %v211_v11  ;;  %v204_v21 = vmax.f32 %v184_v14, 0.0 }
  0xf9   :  { %v179_v20 = vadd.f32 %v403_v34, %v178_v19  ;;  %v202_v23 = vmax.f32 %v176_v16, 0.0 }
  0xfa   :  { %v205_v22 = vmax.f32 %v187_v18, 0.0 }
  0xfb   :  { %v203_v24 = vmax.f32 %v179_v20, 0.0 }
  0xfc   :  { %v213_v25 = vpack.c.bf16 %v205_v22, %v204_v21 }
  0xfd   :  { %v212_v26 = vpack.c.bf16 %v203_v24, %v202_v23 }
  0xff   :  { %497 = vmatprep.mubr.bf16.mxu1 %v212_v26 }
 0x100   :  { %498 = vmatmul.mubr.bf16.gmra.mrb[8].mxu1 %v213_v25 }
 0x1bb   :  { %v487_v28 = vpop.f32.mrb[16].mxu0 }
 0x1bc   :  { %v328_v29 = vadd.f32 %v487_v28, %v414_v27  ;;  %v319_v30 = vpop.f32.mrb[17].mxu0 }
 0x1bd   :  { %v320_v31 = vadd.f32 %v414_v27, %v319_v30  ;;  %v488_v32 = vpop.f32.mrb[18].mxu0 }
 0x1be   :  { %385 = vst.msk [vmem:[%s718_s5 + $0x10] sm:$0xff] %vm382_vm1, %v328_v29  ;;  %v331_v33 = vadd.f32 %v488_v32, %v414_v27  ;;  %v322_v34 = vpop.f32.mrb[19].mxu0 }
 0x1bf   :  { %383 = vst.msk [vmem:[%s718_s5] sm:$0xff] %vm382_vm1, %v320_v31  ;;  %v323_v35 = vadd.f32 %v414_v27, %v322_v34 }
 0x1c0   :  { %386 = vst.msk [vmem:[%s718_s5 + $0x18] sm:$0xff] %vm382_vm1, %v331_v33 }
 0x1c1   :  { %384 = vst.msk [vmem:[%s718_s5 + $0x8] sm:$0xff] %vm382_vm1, %v323_v35 }
 0x1c3   :  { %v491_v36 = vpop.f32.mrb[0].mxu1 }
 0x1c4   :  { %v344_v37 = vadd.f32 %v491_v36, %v414_v27  ;;  %v335_v38 = vpop.f32.mrb[1].mxu1 }
 0x1c5   :  { %v336_v39 = vadd.f32 %v414_v27, %v335_v38  ;;  %v492_v40 = vpop.f32.mrb[2].mxu1 }
 0x1c6   :  { %389 = vst.msk [vmem:[%s718_s5 + $0x30] sm:$0xff] %vm382_vm1, %v344_v37  ;;  %v347_v41 = vadd.f32 %v492_v40, %v414_v27  ;;  %v338_v42 = vpop.f32.mrb[3].mxu1 }
 0x1c7   :  { %387 = vst.msk [vmem:[%s718_s5 + $0x20] sm:$0xff] %vm382_vm1, %v336_v39  ;;  %v339_v43 = vadd.f32 %v414_v27, %v338_v42 }
 0x1c8   :  { %390 = vst.msk [vmem:[%s718_s5 + $0x38] sm:$0xff] %vm382_vm1, %v347_v41 }
 0x1c9   :  { %388 = vst.msk [vmem:[%s718_s5 + $0x28] sm:$0xff] %vm382_vm1, %v339_v43 }
 0x1cb   :  { %v495_v44 = vpop.f32.mrb[4].mxu1 }
 0x1cc   :  { %v360_v45 = vadd.f32 %v495_v44, %v414_v27  ;;  %v351_v46 = vpop.f32.mrb[5].mxu1 }
 0x1cd   :  { %v352_v47 = vadd.f32 %v414_v27, %v351_v46  ;;  %v496_v48 = vpop.f32.mrb[6].mxu1 }
 0x1ce   :  { %393 = vst.msk [vmem:[%s718_s5 + $0x50] sm:$0xff] %vm382_vm1, %v360_v45  ;;  %v363_v49 = vadd.f32 %v496_v48, %v414_v27  ;;  %v354_v50 = vpop.f32.mrb[7].mxu1 }
 0x1cf   :  { %391 = vst.msk [vmem:[%s718_s5 + $0x40] sm:$0xff] %vm382_vm1, %v352_v47  ;;  %v355_v51 = vadd.f32 %v414_v27, %v354_v50 }
 0x1d0   :  { %394 = vst.msk [vmem:[%s718_s5 + $0x58] sm:$0xff] %vm382_vm1, %v363_v49 }
 0x1d1   :  { %392 = vst.msk [vmem:[%s718_s5 + $0x48] sm:$0xff] %vm382_vm1, %v355_v51 }
 0x1d3   :  { %v499_v52 = vpop.f32.mrb[8].mxu1 }
 0x1d4   :  { %v376_v53 = vadd.f32 %v499_v52, %v414_v27  ;;  %v367_v54 = vpop.f32.mrb[9].mxu1 }
 0x1d5   :  { %v368_v55 = vadd.f32 %v414_v27, %v367_v54  ;;  %v500_v56 = vpop.f32.mrb[10].mxu1 }
 0x1d6   :  { %397 = vst.msk [vmem:[%s718_s5 + $0x70] sm:$0xff] %vm382_vm1, %v376_v53  ;;  %v379_v57 = vadd.f32 %v500_v56, %v414_v27  ;;  %v370_v58 = vpop.f32.mrb[11].mxu1 }
 0x1d7   :  { %395 = vst.msk [vmem:[%s718_s5 + $0x60] sm:$0xff] %vm382_vm1, %v368_v55  ;;  %v371_v59 = vadd.f32 %v414_v27, %v370_v58 }
 0x1d8   :  { %398 = vst.msk [vmem:[%s718_s5 + $0x78] sm:$0xff] %vm382_vm1, %v379_v57 }
 0x1d9   :  { %396 = vst.msk [vmem:[%s718_s5 + $0x68] sm:$0xff] %vm382_vm1, %v371_v59 }

</bundles_post_ra>
